<compile_context>
chip_gen: v5e
topology: v5e:2x2
jax: 0.10.0
libtpu: 0.0.40
codegen_flags: <defaults>
</compile_context>

<pallas_src>
import functools
import math

import jax
import jax.numpy as jnp
from jax.experimental import pallas as pl
from jax.experimental.pallas import tpu as pltpu

N_QUBITS = 6
_TWO_PI = 2.0 * math.pi


def _quantum_layer_kernel(xq_ref, cw_ref, o_ref):
    # xq_ref: (N_QUBITS, TB) f32 VMEM — row j = data feature of qubit j, batch on lanes
    # cw_ref: (N_QUBITS, 1)  f32 VMEM — cos(weights), precomputed in the wrapper
    # o_ref : (N_QUBITS, TB) f32 VMEM — row j = P(measured classical bit j = 1)

    # d_j = 1 - 2*P(q_j=1) = cos(2*pi*x_j) * cos(w_j)
    # Full-block EUP cos + one VPU multiply (cw broadcast along the 128-lane axis).
    d = jnp.cos(xq_ref[...] * _TWO_PI) * cw_ref[...]

    # Hillis-Steele prefix product along the sublane (qubit) axis:
    #   g[j] = prod_{k<=j} d[k]  after 3 shifted-multiply steps (s = 1, 2, 4).
    # The shift is expressed as concat(ones, a[:-s]) so the wrapped-in rows are
    # identity elements; no roll-direction ambiguity and no per-row loops.
    a = d
    a2 = d  # value after the s=2 step; a2[4] = d1*d2*d3*d4 (needed for bit 0)
    for s in (1, 2, 4):
        ones = jnp.ones((s,) + a.shape[1:], a.dtype)
        shifted = jnp.concatenate([ones, a[:-s, :]], axis=0)
        a = a * shifted
        if s == 2:
            a2 = a
    g = a  # g[j] = d0 * d1 * ... * dj

    # Measured bit j after the CNOT ring:
    #   j >= 1 : XOR of q_0..q_j      -> product g[j]
    #   j == 0 : XOR of q_1..q_{n-1}  -> product t = d5 * (d1*d2*d3*d4) = d5 * a2[4]
    t = d[N_QUBITS - 1:N_QUBITS, :] * a2[N_QUBITS - 2:N_QUBITS - 1, :]  # (1, TB)
    row = jax.lax.broadcasted_iota(jnp.int32, g.shape, 0)
    prod_all = jnp.where(row >= 1, g, jnp.broadcast_to(t, g.shape))

    # P(XOR = 1) = (1 - prod) / 2 ; single dense (unmasked) full-block store.
    o_ref[...] = 0.5 - 0.5 * prod_all


def _round_up(n, m):
    return ((n + m - 1) // m) * m


def _tiles(batch, tb):
    """Lane tiling: pad batch to a multiple of 128, split into n tiles of tb_eff
    lanes.  Ensures >= 2 tiles for large batches so ("parallel",) grid semantics
    can use both TensorCores on v7x; padding is at most 128 lanes per tile."""
    bp128 = _round_up(max(batch, 1), 128)
    n = max(1, -(-bp128 // tb))
    if n == 1 and bp128 >= 16384:  # big enough to split across 2 TCs (v7x)
        n = 2
    tb_eff = _round_up(-(-bp128 // n), 128)
    return n, tb_eff


@functools.partial(jax.jit, static_argnames=("tb",))
def quantum_layer_forward_qubit_major(x_qm, weights, *, tb=32768):
    """Layout-optimal entry point (no wrapper transposes / extra HBM passes).

    x_qm:    (N_QUBITS, B) f32 — row j holds data feature j (angle = x * 2*pi).
    weights: (N_QUBITS,)   f32 — RX angles.
    returns: (N_QUBITS, B) f32 — row j = exact P(measured classical bit j = 1).
    """
    nq, B = x_qm.shape
    assert nq == N_QUBITS
    n, tb_eff = _tiles(B, tb)
    bp = n * tb_eff

    xq = x_qm.astype(jnp.float32)
    if bp != B:
        xq = jnp.pad(xq, ((0, 0), (0, bp - B)))  # zero pad -> cos(0)=1, no NaNs

    # Precompute cos(weights) once; the kernel never touches the raw angles.
    cos_w = jnp.cos(weights.astype(jnp.float32)).reshape(N_QUBITS, 1)

    out = pl.pallas_call(
        _quantum_layer_kernel,
        out_shape=jax.ShapeDtypeStruct((N_QUBITS, bp), jnp.float32),
        grid=(n,),
        in_specs=[
            pl.BlockSpec((N_QUBITS, tb_eff), lambda i: (0, i)),
            pl.BlockSpec((N_QUBITS, 1), lambda i: (0, 0)),  # cos(w) column in VMEM
        ],
        out_specs=pl.BlockSpec((N_QUBITS, tb_eff), lambda i: (0, i)),
        compiler_params=pltpu.CompilerParams(
            dimension_semantics=("parallel",),  # batch tiles over 2 TCs on v7x
        ),
    )(xq, cos_w)
    return out[:, :B]


@functools.partial(jax.jit, static_argnames=("tb",))
def quantum_layer_forward(x, weights, *, tb=32768):
    """Drop-in equivalent of QuantumLayer.forward: x (B, F) -> (B, N_QUBITS).

    Column i = P(measured bit n-1-i = 1) (qiskit bitstring-string order).
    The slice/transpose in and reversed transpose out are wrapper-side layout
    plumbing only; inside a network keep activations qubit-major end-to-end
    (use quantum_layer_forward_qubit_major) to avoid these extra HBM passes.
    """
    B, F = x.shape
    assert F >= N_QUBITS
    x_qm = jnp.transpose(x[:, :N_QUBITS].astype(jnp.float32))  # (N_QUBITS, B)
    out_qm = quantum_layer_forward_qubit_major(x_qm, weights, tb=tb)
    # module column i reports measured bit (n-1-i): reverse rows, transpose back
    return jnp.transpose(out_qm[::-1, :])


def _reference(x, weights):
    # Pure-JAX reference of the same closed-form math (independent formulation
    # of p1 via sin^2/cos^2 and jnp.cumprod); it does not re-validate the
    # XOR/bit-order derivation against qiskit itself.
    theta = x[:, :N_QUBITS].astype(jnp.float32) * _TWO_PI
    p1 = (jnp.sin(0.5 * weights) ** 2)[None, :] * jnp.cos(0.5 * theta) ** 2 + \
         (jnp.cos(0.5 * weights) ** 2)[None, :] * jnp.sin(0.5 * theta) ** 2
    d = 1.0 - 2.0 * p1
    prefix = jnp.cumprod(d, axis=1)
    pf = [0.5 * (1.0 - jnp.prod(d[:, 1:], axis=1, keepdims=True))]
    for k in range(1, N_QUBITS):
        pf.append(0.5 * (1.0 - prefix[:, k:k + 1]))
    return jnp.concatenate([pf[N_QUBITS - 1 - i] for i in range(N_QUBITS)], axis=1)


if __name__ == "__main__":
    key = jax.random.PRNGKey(0)
    kx, kw, kx2 = jax.random.split(key, 3)

    # Small shapes consistent with the module: batch of flattened samples whose
    # first n_qubits entries feed the circuit as data angles.
    B, F = 8, 16
    x = jax.random.uniform(kx, (B, F), dtype=jnp.float32)          # inputs in [0,1)
    weights = jax.random.uniform(kw, (N_QUBITS,), dtype=jnp.float32) * 2.0 * math.pi

    out = jax.block_until_ready(quantum_layer_forward(x, weights))
    assert out.shape == (B, N_QUBITS) and out.dtype == jnp.float32
    assert jnp.allclose(out, _reference(x, weights), atol=1e-5, rtol=1e-5)

    # Exercise a multi-step batch grid + lane padding (3 tiles of 128, B=300).
    B2 = 300
    x2 = jax.random.uniform(kx2, (B2, F), dtype=jnp.float32)
    out2 = jax.block_until_ready(quantum_layer_forward(x2, weights, tb=128))
    assert out2.shape == (B2, N_QUBITS)
    assert jnp.allclose(out2, _reference(x2, weights), atol=1e-5, rtol=1e-5)

    # Qubit-major fast path (no wrapper transposes) agrees with the compat path.
    out_qm = jax.block_until_ready(
        quantum_layer_forward_qubit_major(jnp.transpose(x[:, :N_QUBITS]), weights))
    assert jnp.allclose(jnp.transpose(out_qm[::-1, :]), out, atol=1e-6)

    print("KERNEL_OK")
</pallas_src>

<mosaic_0001>
module attributes {stable_mosaic.version = 11 : i64} {
  func.func @_quantum_layer_kernel(%arg0: i32, %arg1: memref<6x128xf32, #tpu.memory_space<vmem>>, %arg2: memref<6x1xf32, #tpu.memory_space<vmem>>, %arg3: memref<6x128xf32, #tpu.memory_space<vmem>>) attributes {dimension_semantics = [#tpu.dimension_semantics<parallel>], iteration_bounds = array<i64: 1>, scalar_prefetch = 0 : i64, scratch_operands = 0 : i64, tpu.core_type = #tpu.core_type<tc>, window_params = [{transform_indices = @transform_0, window_bounds = array<i64: 6, 128>}, {pipeline_mode = #tpu.pipeline_mode<synchronous>, transform_indices = @transform_1, window_bounds = array<i64: 6, 1>}, {transform_indices = @transform_2, window_bounds = array<i64: 6, 128>}]} {
    %c0 = arith.constant 0 : index
    %c0_0 = arith.constant 0 : index
    %0 = vector.load %arg1[%c0, %c0_0] : memref<6x128xf32, #tpu.memory_space<vmem>>, vector<6x128xf32>
    %cst = arith.constant 6.28318548 : f32
    %1 = vector.broadcast %cst : f32 to vector<6x128xf32>
    %2 = arith.mulf %0, %1 : vector<6x128xf32>
    %3 = math.cos %2 : vector<6x128xf32>
    %c0_1 = arith.constant 0 : index
    %c0_2 = arith.constant 0 : index
    %4 = vector.load %arg2[%c0_1, %c0_2] : memref<6x1xf32, #tpu.memory_space<vmem>>, vector<6x1xf32>
    %5 = vector.broadcast %4 : vector<6x1xf32> to vector<6x128xf32>
    %6 = arith.mulf %3, %5 : vector<6x128xf32>
    %cst_3 = arith.constant 1.000000e+00 : f32
    %7 = vector.broadcast %cst_3 : f32 to vector<1x128xf32>
    %8 = vector.extract_strided_slice %6 {offsets = [0, 0], sizes = [5, 128], strides = [1, 1]} : vector<6x128xf32> to vector<5x128xf32>
    %9 = tpu.concatenate %7, %8 in 0 : vector<1x128xf32>, vector<5x128xf32> -> vector<6x128xf32>
    %10 = arith.mulf %6, %9 : vector<6x128xf32>
    %cst_4 = arith.constant 1.000000e+00 : f32
    %11 = vector.broadcast %cst_4 : f32 to vector<2x128xf32>
    %12 = vector.extract_strided_slice %10 {offsets = [0, 0], sizes = [4, 128], strides = [1, 1]} : vector<6x128xf32> to vector<4x128xf32>
    %13 = tpu.concatenate %11, %12 in 0 : vector<2x128xf32>, vector<4x128xf32> -> vector<6x128xf32>
    %14 = arith.mulf %10, %13 : vector<6x128xf32>
    %cst_5 = arith.constant 1.000000e+00 : f32
    %15 = vector.broadcast %cst_5 : f32 to vector<4x128xf32>
    %16 = vector.extract_strided_slice %14 {offsets = [0, 0], sizes = [2, 128], strides = [1, 1]} : vector<6x128xf32> to vector<2x128xf32>
    %17 = tpu.concatenate %15, %16 in 0 : vector<4x128xf32>, vector<2x128xf32> -> vector<6x128xf32>
    %18 = arith.mulf %14, %17 : vector<6x128xf32>
    %19 = vector.extract_strided_slice %6 {offsets = [5, 0], sizes = [1, 128], strides = [1, 1]} : vector<6x128xf32> to vector<1x128xf32>
    %20 = vector.extract_strided_slice %14 {offsets = [4, 0], sizes = [1, 128], strides = [1, 1]} : vector<6x128xf32> to vector<1x128xf32>
    %21 = arith.mulf %19, %20 : vector<1x128xf32>
    %22 = tpu.iota {dimensions = array<i32: 0>} : vector<6x128xi32>
    %c1_i32 = arith.constant 1 : i32
    %23 = vector.broadcast %c1_i32 : i32 to vector<6x128xi32>
    %24 = arith.cmpi sge, %22, %23 : vector<6x128xi32>
    %25 = vector.shape_cast %21 : vector<1x128xf32> to vector<1x128xf32>
    %26 = vector.broadcast %25 : vector<1x128xf32> to vector<6x128xf32>
    %27 = arith.select %24, %18, %26 : vector<6x128xi1>, vector<6x128xf32>
    %cst_6 = arith.constant 5.000000e-01 : f32
    %28 = vector.broadcast %cst_6 : f32 to vector<6x128xf32>
    %29 = arith.mulf %28, %27 : vector<6x128xf32>
    %cst_7 = arith.constant 5.000000e-01 : f32
    %30 = vector.broadcast %cst_7 : f32 to vector<6x128xf32>
    %31 = arith.subf %30, %29 : vector<6x128xf32>
    %c0_8 = arith.constant 0 : index
    %c0_9 = arith.constant 0 : index
    %32 = vector.load %arg3[%c0_8, %c0_9] : memref<6x128xf32, #tpu.memory_space<vmem>>, vector<6x128xf32>
    tpu.vector_store %arg3[%c0_8, %c0_9], %31 {strides = array<i32>} : memref<6x128xf32, #tpu.memory_space<vmem>>, vector<6x128xf32>,
    return
  }
  func.func @transform_0(%arg0: i32) -> (i32, i32) {
    %c0_i32 = arith.constant 0 : i32
    %c0_i32_0 = arith.constant 0 : i32
    return %c0_i32, %arg0 : i32, i32
  }
  func.func @transform_1(%arg0: i32) -> (i32, i32) {
    %c0_i32 = arith.constant 0 : i32
    %c0_i32_0 = arith.constant 0 : i32
    %c0_i32_1 = arith.constant 0 : i32
    return %c0_i32, %c0_i32_0 : i32, i32
  }
  func.func @transform_2(%arg0: i32) -> (i32, i32) {
    %c0_i32 = arith.constant 0 : i32
    %c0_i32_0 = arith.constant 0 : i32
    return %c0_i32, %arg0 : i32, i32
  }
}

</mosaic_0001>

<bundles_post_ra>
// kernel: quantum_layer_forward_qubit_major.1
= control target key start
LH: loop header
LB: loop body
LE: loop exit
PB: predicated region body
PF: predicated region fallthrough
CT: control target
= control target key end

     0   :  { %v258_v1 = vmov 0   ;;  %s353_s0 = inlined_call_operand.vmem [shape: f32[6,128], index: 0, kind: input, shape index: {}]   ;;  %s354_s1 = inlined_call_operand.vmem [shape: f32[6,1], index: 1, kind: input, shape index: {}]   ;;  %s355_s2 = inlined_call_operand.hbm [shape: f32[6,128], index: 2, kind: output, shape index: {}]  }
   0x1   :  { %v12_v0 = vld [vmem:[%s353_s0] sm:$0x3f]  ;;  %231 = vset.pattern.permute.xlu0 %v258_v1 }
   0x2   :  { %v285_v2 = vmul.f32 6.2831855, %v12_v0  ;;  %v168_v4 = vld [vmem:[%s354_s1] sm:$0x3f] }
   0x3   :  { %171 = vperm.xlu0 %231, %v168_v4  }
   0x4   :  { %v17_v3 = vand.u32 2139095040, %v285_v2  ;;  %v14_v5 = vand.u32 2147483647, %v285_v2 }
   0x5   :  { %7 = vsyncpa [#allocation3], 0  ;;  %v259_v15 = vmov 683565275   ;;  %v260_v17 = vmov 2475754826  }
   0x6   :  { %v18_v6 = vshrl.u32 %v17_v3, 23  ;;  %v21_v8 = vand.u32 8388607, %v14_v5  ;;  %v261_v19 = vmov 2131351028   ;;  %vm16_vm12 = vcmp.lt.s32.totalorder %v285_v2, 0 }
   0x7   :  { %v262_v21 = vmov 2102212464   ;;  %v263_v23 = vmov 920167782   ;;  %v264_v30 = vmov 1326507024  }
   0x8   :  { %v220_v7 = vadd.s32 4294967169, %v18_v6  ;;  %v22_v10 = vor.u32 8388608, %v21_v8  ;;  %vm336_vm13 = vcmp.le.f32.partialorder %v14_v5, 0.7853982  ;;  %s265_s0 = smov [#allocation2]   ;;  %s211_s15 = sshll.u32 %s355_s2, 4  ;;  %s212_s15 = int_to_ptr.hbm [resolvable:$true] %s211_s15 }
   0x9   :  { %s209_s1 = sshll.u32 %s265_s0, 4  ;;  %s210_s1 = int_to_ptr.vmem [resolvable:$true] %s209_s1 }
   0xa   :  { %v24_v9 = vadd.s32 1, %v220_v7  ;;  %v296_v25 = vshll.u32 %v22_v10, 8 }
   0xc   :  { %vm25_vm0 = vcmp.gt.s32.totalorder %v24_v9, 0  ;;  %v63_v42 = vand.u32 65535, %v296_v25  ;;  %v64_v43 = vshrl.u32 %v296_v25, 16 }
   0xd   :  { %v26_v11 = vsel %vm25_vm0, %v24_v9, 0 }
   0xe   :  { %v28_v12 = vand.u32 31, %v26_v11  ;;  %v294_v13 = vshrl.u32 %v26_v11, 5 }
  0x10   :  { %v29_v14 = vsub.s32 32, %v28_v12  ;;  %v31_v16 = vshll.u32 %v259_v15, %v28_v12  ;;  %v34_v18 = vshll.u32 %v260_v17, %v28_v12  ;;  %v37_v20 = vshll.u32 %v261_v19, %v28_v12 }
  0x11   :  { %v40_v22 = vshll.u32 %v262_v21, %v28_v12  ;;  %v43_v24 = vshll.u32 %v263_v23, %v28_v12  ;;  %vm46_vm1 = vcmp.lt.s32.totalorder %v294_v13, 1  ;;  %vm48_vm2 = vcmp.lt.s32.totalorder %v294_v13, 3 }
  0x12   :  { %v32_v26 = vshrl.u32 %v260_v17, %v29_v14  ;;  %v35_v27 = vshrl.u32 %v261_v19, %v29_v14  ;;  %v38_v28 = vshrl.u32 %v262_v21, %v29_v14  ;;  %v41_v29 = vshrl.u32 %v263_v23, %v29_v14 }
  0x13   :  { %v44_v31 = vshrl.u32 %v264_v30, %v29_v14  ;;  %vm49_vm3 = vcmp.lt.s32.totalorder %v294_v13, 4  ;;  %vm47_vm4 = vcmp.lt.s32.totalorder %v294_v13, 2  ;;  %v30_v60 = vshrl.u32 %v259_v15, %v29_v14 }
  0x14   :  { %v33_v32 = vor.u32 %v32_v26, %v31_v16  ;;  %v36_v33 = vor.u32 %v35_v27, %v34_v18  ;;  %v39_v34 = vor.u32 %v38_v28, %v37_v20  ;;  %v42_v35 = vor.u32 %v41_v29, %v40_v22 }
  0x15   :  { %v45_v36 = vor.u32 %v44_v31, %v43_v24 }
  0x16   :  { %v54_v37 = vsel %vm46_vm1, %v33_v32, %v36_v33  ;;  %v55_v38 = vsel %vm49_vm3, %v42_v35, 920167782  ;;  %v58_v39 = vsel %vm46_vm1, %v36_v33, %v39_v34  ;;  %v51_v4 = vsel %vm49_vm3, %v39_v34, 2102212464 }
  0x17   :  { %v56_v40 = vsel %vm48_vm2, %v39_v34, %v55_v38  ;;  %v59_v41 = vsel %vm49_vm3, %v45_v36, 1326507024  ;;  %v50_v11 = vsel %vm46_vm1, %v30_v60, %v33_v32  ;;  %v52_v15 = vsel %vm48_vm2, %v36_v33, %v51_v4 }
  0x18   :  { %v57_v44 = vsel %vm47_vm4, %v54_v37, %v56_v40  ;;  %v60_v45 = vsel %vm48_vm2, %v42_v35, %v59_v41  ;;  %v53_v22 = vsel %vm47_vm4, %v50_v11, %v52_v15  ;;  %vm157_vm1 = vweird.f32 %v285_v2 }
  0x19   :  { %v61_v46 = vsel %vm47_vm4, %v58_v39, %v60_v45  ;;  %v87_v47 = vand.u32 65535, %v57_v44  ;;  %v88_v48 = vshrl.u32 %v57_v44, 16  ;;  %v107_v28 = vmul.u32 %v296_v25, %v53_v22 }
  0x1a   :  { %v65_v49 = vand.u32 65535, %v61_v46  ;;  %v66_v50 = vshrl.u32 %v61_v46, 16  ;;  %vm178_vm2 = vcmask 1040384   ;;  %vm184_vm3 = vcmask 1041408  }
  0x1b   :  { %v89_v51 = vmul.u32 %v87_v47, %v63_v42  ;;  %v90_v52 = vmul.u32 %v88_v48, %v63_v42  ;;  %v91_v53 = vmul.u32 %v87_v47, %v64_v43  ;;  %v92_v57 = vmul.u32 %v88_v48, %v64_v43 }
  0x1c   :  { %v67_v54 = vmul.u32 %v65_v49, %v63_v42  ;;  %v68_v55 = vmul.u32 %v66_v50, %v63_v42  ;;  %v69_v56 = vmul.u32 %v65_v49, %v64_v43  ;;  %v70_v61 = vmul.u32 %v66_v50, %v64_v43 }
  0x1d   :  { %v93_v58 = vshll.u32 %v90_v52, 16  ;;  %v95_v59 = vshll.u32 %v91_v53, 16  ;;  %v94_v0 = vshrl.u32 %v90_v52, 16  ;;  %v96_v17 = vshrl.u32 %v91_v53, 16 }
  0x1e   :  { %v71_v62 = vshll.u32 %v68_v55, 16  ;;  %v73_v63 = vshll.u32 %v69_v56, 16  ;;  %v72_v6 = vshrl.u32 %v68_v55, 16  ;;  %v74_v19 = vshrl.u32 %v69_v56, 16 }
  0x1f   :  { %vm97_vm5 = vc.u32 %v89_v51, %v93_v58  ;;  %v99_v3 = vadd.s32 %v93_v58, %v89_v51  ;;  %vm190_vm4 = vcmask 1043456  }
  0x20   :  { %vm75_vm6 = vc.u32 %v67_v54, %v71_v62  ;;  %v77_v7 = vadd.s32 %v71_v62, %v67_v54  ;;  %v98_v8 = vsel %vm97_vm5, 1, %v258_v1 }
  0x21   :  { %v76_v9 = vsel %vm75_vm6, 1, %v258_v1  ;;  %v100_v10 = vadd.s32 %v98_v8, %v92_v57  ;;  %vm101_vm7 = vc.u32 %v99_v3, %v95_v59  ;;  %v103_v24 = vadd.s32 %v99_v3, %v95_v59 }
  0x22   :  { %v78_v12 = vadd.s32 %v76_v9, %v70_v61  ;;  %vm79_vm8 = vc.u32 %v77_v7, %v73_v63  ;;  %v102_v14 = vsel %vm101_vm7, 1, %v258_v1 }
  0x23   :  { %v80_v16 = vsel %vm79_vm8, 1, %v258_v1  ;;  %v104_v18 = vadd.s32 %v102_v14, %v100_v10 }
  0x24   :  { %v82_v20 = vadd.s32 %v80_v16, %v78_v12 }
  0x25   :  { %v105_v21 = vadd.s32 %v104_v18, %v94_v0 }
  0x26   :  { %v83_v23 = vadd.s32 %v82_v20, %v72_v6 }
  0x27   :  { %v106_v26 = vadd.s32 %v105_v21, %v96_v17 }
  0x28   :  { %v84_v27 = vadd.s32 %v83_v23, %v74_v19  ;;  %v196_v23 = vlaneseq }
  0x29   :  { %v110_v29 = vadd.s32 1, %v106_v26 }
  0x2a   :  { %vm109_vm9 = vc.u32 %v84_v27, %v103_v24  ;;  %v108_v38 = vadd.s32 %v103_v24, %v84_v27  ;;  %v197_v27 = vshrl.u32 %v196_v23, 7 }
  0x2b   :  { %v111_v30 = vsel %vm109_vm9, %v110_v29, %v106_v26 }
  0x2c   :  { %v112_v31 = vadd.s32 %v111_v30, %v107_v28  ;;  %vm198_vm5 = vcmp.ge.s32.totalorder %v197_v27, 1 }
  0x2e   :  { %v113_v32 = vadd.s32 536870912, %v112_v31 }
  0x30   :  { %v114_v1 = vshrl.u32 %v113_v32, 30 }
  0x32   :  { %v115_v33 = vshll.u32 %v114_v1, 30  ;;  %v138_v5 = vsub.s32 4, %v114_v1 }
  0x34   :  { %v116_v34 = vsub.s32 %v112_v31, %v115_v33  ;;  %v139_v0 = vsel %vm16_vm12, %v138_v5, %v114_v1 }
  0x35   :  { %v141_v6 = vsel %vm336_vm13, 0, %v139_v0 }
  0x36   :  { %vm117_vm10 = vcmp.lt.s32.totalorder %v116_v34, 0  ;;  %v118_v35 = vsub.s32 0, %v116_v34  ;;  %v158_v9 = vand.u32 3, %v141_v6 }
  0x38   :  { %v119_v36 = vsel %vm117_vm10, %v118_v35, %v116_v34  ;;  %vm160_vm14 = vcmp.eq.s32.totalorder %v158_v9, 0  ;;  %vm163_vm15 = vcmp.eq.s32.totalorder %v158_v9, 2  ;;  %vm159_vm0 = vcmp.lt.s32.totalorder %v158_v9, 2 }
  0x39   :  { %v120_v37 = vclz %v119_v36 }
  0x3b   :  { %v221_v13 = vadd.s32 4294967294, %v120_v37 }
  0x3d   :  { %vm222_vm11 = vcmp.lt.s32.totalorder %v221_v13, 0 }
  0x3e   :  { %v123_v39 = vsel %vm222_vm11, 0, %v221_v13 }
  0x3f   :  { %v124_v40 = vsub.s32 32, %v123_v39  ;;  %v125_v41 = vshll.u32 %v116_v34, %v123_v39  ;;  %v128_v42 = vsub.s32 4294967266, %v123_v39 }
  0x41   :  { %v126_v25 = vshrl.u32 %v108_v38, %v124_v40  ;;  %v129_v43 = vadd.s32 127, %v128_v42 }
  0x43   :  { %v127_v44 = vor.u32 %v126_v25, %v125_v41  ;;  %v130_v45 = vshll.u32 %v129_v43, 23 }
  0x45   :  { %v131_v46 = vor.u32 4788187, %v130_v45  ;;  %v134_v47 = vcvt.s32.f32 %v127_v44 }
  0x47   :  { %v132_v48 = vand.u32 2147483647, %v131_v46 }
  0x49   :  { %v135_v49 = vmul.f32 %v134_v47, %v132_v48 }
  0x4b   :  { %v136_v51 = vxor.u32 2147483648, %v135_v49 }
  0x4d   :  { %v137_v52 = vsel %vm16_vm12, %v136_v51, %v135_v49 }
  0x4e   :  { %v140_v53 = vsel %vm336_vm13, %v285_v2, %v137_v52 }
  0x4f   :  { %v142_v54 = vmul.f32 %v140_v53, %v140_v53 }
  0x51   :  { %v150_v55 = vmul.f32 -0.00019511016, %v142_v54  ;;  %v143_v56 = vmul.f32 -0.001358992, %v142_v54 }
  0x53   :  { %v151_v57 = vadd.f32 0.008332121, %v150_v55  ;;  %v144_v58 = vadd.f32 0.041655596, %v143_v56 }
  0x55   :  { %v152_v59 = vmul.f32 %v151_v57, %v142_v54  ;;  %v145_v60 = vmul.f32 %v144_v58, %v142_v54 }
  0x57   :  { %v153_v61 = vadd.f32 -0.16666654, %v152_v59  ;;  %v146_v62 = vadd.f32 -0.4999988, %v145_v60 }
  0x59   :  { %v154_v63 = vmul.f32 %v153_v61, %v142_v54  ;;  %v147_v3 = vmul.f32 %v146_v62, %v142_v54 }
  0x5b   :  { %v155_v4 = vadd.f32 1.0, %v154_v63  ;;  %v148_v7 = vadd.f32 1.0, %v147_v3 }
  0x5d   :  { %v156_v8 = vmul.f32 %v155_v4, %v140_v53  ;;  %v164_v11 = vxor.u32 2147483648, %v148_v7 }
  0x5f   :  { %v161_v10 = vxor.u32 2147483648, %v156_v8  ;;  %v165_v14 = vsel %vm163_vm15, %v164_v11, %v156_v8 }
  0x61   :  { %v162_v12 = vsel %vm160_vm14, %v148_v7, %v161_v10 }
  0x62   :  { %v166_v15 = vsel %vm159_vm0, %v162_v12, %v165_v14 }
  0x63   :  { %v167_v16 = vsel %vm157_vm1, nan, %v166_v15 }
  0x75   :  { %v172_v17 = vpop.permute.xlu0 %171 }
  0x76   :  { %v174_v18 = vmul.f32 %v172_v17, %v167_v16 }
  0x78   :  { %v176_v19 = vrot.slane %v174_v18, 7 }
  0x7a   :  { %v179_v20 = vsel %vm178_vm2, 1.0, %v176_v19 }
  0x7b   :  { %v180_v21 = vmul.f32 %v179_v20, %v174_v18 }
  0x7d   :  { %v182_v22 = vrot.slane %v180_v21, 6 }
  0x7f   :  { %v185_v24 = vsel %vm184_vm3, 1.0, %v182_v22 }
  0x80   :  { %v186_v26 = vmul.f32 %v185_v24, %v180_v21 }
  0x82   :  { %v188_v28 = vrot.slane %v186_v26, 4  ;;  %v193_v29 = vrot.slane %v186_v26, 7 }
  0x84   :  { %v195_v30 = vmul.f32 %v193_v29, %v174_v18  ;;  %v191_v31 = vsel %vm190_vm4, 1.0, %v188_v28 }
  0x85   :  { %v192_v2 = vmul.f32 %v191_v31, %v186_v26 }
  0x86   :  { %v199_v32 = vperm.slane %v195_v30, 5 }
  0x88   :  { %v200_v1 = vsel %vm198_vm5, %v192_v2, %v199_v32 }
  0x89   :  { %v201_v33 = vmul.f32 0.5, %v200_v1 }
  0x8b   :  { %v202_v34 = vsub.f32 0.5, %v201_v33 }
  0x8d   :  { %203 = vst [vmem:[#allocation2] sm:$0x3f] %v202_v34 }
  0x8e   :  { %214 = dma.vmem_to_hbm [thread:$0]  %s210_s1, 128, %s212_s15, [#allocation3]  }
  0x8f   :  { %256 = dma.done.wait [#allocation3], 128  }
  0x90   :  { %257 = vsyncadd [#allocation3], 4294967168 }
  0x91   :  { %219 = vsyncpa [#allocation3], 1 }

</bundles_post_ra>
